<compile_context>
chip_gen: v7x
topology: tpu7x:2x2x1
jax: 0.10.0
libtpu: 0.0.40
codegen_flags: <defaults>
</compile_context>

<pallas_src>
import jax
import jax.numpy as jnp
from jax.experimental import pallas as pl
from jax.experimental.pallas import tpu as pltpu


def _round_up(x, m):
    return ((x + m - 1) // m) * m


def pinn_mlp_kernel(x_ref,
                    w1_ref, b1_ref,
                    w2_ref, b2_ref,
                    w3_ref, b3_ref,
                    w4_ref, b4_ref,
                    o_ref):
    """Fused 4-layer MLP with tanh activations.

    Weights arrive in bf16 (full-rate MXU path); all matmuls accumulate in f32
    via preferred_element_type, and the bias add / tanh are done in f32.
    """
    x = x_ref[...].astype(jnp.bfloat16)                                   # (TB, S)
    h1 = jnp.tanh(jnp.dot(x, w1_ref[...],
                          preferred_element_type=jnp.float32) + b1_ref[...])
    h2 = jnp.tanh(jnp.dot(h1.astype(jnp.bfloat16), w2_ref[...],
                          preferred_element_type=jnp.float32) + b2_ref[...])
    h3 = jnp.tanh(jnp.dot(h2.astype(jnp.bfloat16), w3_ref[...],
                          preferred_element_type=jnp.float32) + b3_ref[...])
    out = jnp.dot(h3.astype(jnp.bfloat16), w4_ref[...],
                  preferred_element_type=jnp.float32) + b4_ref[...]
    o_ref[...] = out.astype(o_ref.dtype)                                  # (TB, Npad)


def adaptive_pinn_forward(state, params, *, tile_b=256):
    """state: (B, state_dim) f32.  params: dict of f32 (w1..w4, b1..b4)."""
    B, S = state.shape
    w1, w2, w3, w4 = params["w1"], params["w2"], params["w3"], params["w4"]
    b1, b2, b3, b4 = params["b1"], params["b2"], params["b3"], params["b4"]
    H1, H2, H3 = w1.shape[1], w2.shape[1], w3.shape[1]

    # ---- batch tiling -------------------------------------------------------
    # Multiple of 8 sublanes; as large as requested (default 256, MXU edge on
    # v6e/v7x) but keep at least 2 grid steps when B allows so the "parallel"
    # batch axis can be split across v7x's 2 TensorCores.
    tb = _round_up(min(tile_b, max(B, 8)), 8)
    if B > 8:
        tb = min(tb, _round_up(-(-B // 2), 8))   # ceil(B/2), rounded up to 8
    tb = max(tb, 8)
    num_tiles = -(-B // tb)                      # cdiv: no divisibility assert
    Bp = num_tiles * tb
    x = state if Bp == B else jnp.pad(state, ((0, Bp - B), (0, 0)))

    # ---- lane-dense output --------------------------------------------------
    # Zero-pad the last layer to a multiple of 128 output columns so the
    # per-step stores are unmasked; slice back to S below.
    N = _round_up(S, 128)
    w4p = jnp.pad(w4, ((0, 0), (0, N - S)))
    b4p = jnp.pad(b4, ((0, 0), (0, N - S)))

    # bf16 weights for the MXU; f32 biases (bias add + tanh stay in f32).
    w1b = w1.astype(jnp.bfloat16)
    w2b = w2.astype(jnp.bfloat16)
    w3b = w3.astype(jnp.bfloat16)
    w4b = w4p.astype(jnp.bfloat16)
    b1f = b1.astype(jnp.float32)
    b2f = b2.astype(jnp.float32)
    b3f = b3.astype(jnp.float32)
    b4f = b4p.astype(jnp.float32)

    # Constant index_map: weights/biases are DMA'd into VMEM once and re-used
    # unchanged on every grid step.
    full = lambda shape: pl.BlockSpec(shape, lambda i: (0, 0))

    out = pl.pallas_call(
        pinn_mlp_kernel,
        out_shape=jax.ShapeDtypeStruct((Bp, N), jnp.float32),
        grid_spec=pltpu.PrefetchScalarGridSpec(
            num_scalar_prefetch=0,
            grid=(num_tiles,),
            in_specs=[
                pl.BlockSpec((tb, S), lambda i: (i, 0)),   # state tile
                full((S, H1)), full((1, H1)),              # layer 1
                full((H1, H2)), full((1, H2)),             # layer 2
                full((H2, H3)), full((1, H3)),             # layer 3
                full((H3, N)), full((1, N)),               # layer 4 (padded to N)
            ],
            out_specs=pl.BlockSpec((tb, N), lambda i: (i, 0)),
        ),
        compiler_params=pltpu.CompilerParams(
            dimension_semantics=("parallel",),
            # Headroom for hidden_dim=1024 / large tile_b configs; well below
            # v7x's 64 MiB physical VMEM, above v5e's 16 MiB default scope.
            vmem_limit_bytes=48 * 1024 * 1024,
        ),
    )(x, w1b, b1f, w2b, b2f, w3b, b3f, w4b, b4f)

    return out[:B, :S].astype(state.dtype)


def init_params(key, state_dim, hidden_dim):
    """Deterministic init matching PyTorch nn.Linear default U(-1/sqrt(fan_in), +)."""
    dims = [state_dim, hidden_dim, hidden_dim // 2, hidden_dim // 4, state_dim]
    params = {}
    keys = jax.random.split(key, 8)
    for li in range(4):
        fan_in, fan_out = dims[li], dims[li + 1]
        bound = 1.0 / jnp.sqrt(fan_in)
        w = jax.random.uniform(keys[2 * li], (fan_in, fan_out),
                               minval=-bound, maxval=bound, dtype=jnp.float32)
        b = jax.random.uniform(keys[2 * li + 1], (1, fan_out),
                               minval=-bound, maxval=bound, dtype=jnp.float32)
        params[f"w{li + 1}"] = w
        params[f"b{li + 1}"] = b
    return params


def reference_forward(state, params):
    h = state
    for li in range(1, 4):
        h = jnp.tanh(h @ params[f"w{li}"] + params[f"b{li}"])
    return h @ params["w4"] + params["b4"]


if __name__ == "__main__":
    # state layout implied by compute_pde_residuals: 3 pos + 4 quat + 3 vel
    # + 3 omega + 4 controls + 1 target = 18 features.
    STATE_DIM = 18
    HIDDEN_DIM = 128   # small hidden size for the synthetic test (module default 1024)
    BATCH = 64         # small batch; wrapper tiles it into 2 grid steps

    key = jax.random.PRNGKey(0)
    k_params, k_state = jax.random.split(key)

    params = init_params(k_params, STATE_DIM, HIDDEN_DIM)
    state = jax.random.normal(k_state, (BATCH, STATE_DIM), dtype=jnp.float32)

    out = adaptive_pinn_forward(state, params)
    out = jax.block_until_ready(out)

    ref = reference_forward(state, params)
    assert out.shape == (BATCH, STATE_DIM)
    # bf16 MXU inputs (f32 accumulation) -> loosened tolerance vs f32 reference.
    assert jnp.allclose(out, ref, atol=5e-2, rtol=5e-2), "mismatch vs JAX reference"

    # TODO(synk): compute_pde_residuals / physics_loss rely on autograd + Python
    # state (loss history) and are not part of forward(); not implemented as kernels.
    print("KERNEL_OK")
</pallas_src>

<mosaic_0001>
module attributes {stable_mosaic.version = 11 : i64} {
  func.func @pinn_mlp_kernel(%arg0: i32, %arg1: memref<32x18xf32, #tpu.memory_space<vmem>>, %arg2: memref<18x128xbf16, #tpu.memory_space<vmem>>, %arg3: memref<1x128xf32, #tpu.memory_space<vmem>>, %arg4: memref<128x64xbf16, #tpu.memory_space<vmem>>, %arg5: memref<1x64xf32, #tpu.memory_space<vmem>>, %arg6: memref<64x32xbf16, #tpu.memory_space<vmem>>, %arg7: memref<1x32xf32, #tpu.memory_space<vmem>>, %arg8: memref<32x128xbf16, #tpu.memory_space<vmem>>, %arg9: memref<1x128xf32, #tpu.memory_space<vmem>>, %arg10: memref<32x128xf32, #tpu.memory_space<vmem>>) attributes {dimension_semantics = [#tpu.dimension_semantics<parallel>], iteration_bounds = array<i64: 2>, scalar_prefetch = 0 : i64, scratch_operands = 0 : i64, tpu.core_type = #tpu.core_type<tc>, window_params = [{transform_indices = @transform_0, window_bounds = array<i64: 32, 18>}, {pipeline_mode = #tpu.pipeline_mode<synchronous>, transform_indices = @transform_1, window_bounds = array<i64: 18, 128>}, {pipeline_mode = #tpu.pipeline_mode<synchronous>, transform_indices = @transform_2, window_bounds = array<i64: 1, 128>}, {pipeline_mode = #tpu.pipeline_mode<synchronous>, transform_indices = @transform_3, window_bounds = array<i64: 128, 64>}, {pipeline_mode = #tpu.pipeline_mode<synchronous>, transform_indices = @transform_4, window_bounds = array<i64: 1, 64>}, {pipeline_mode = #tpu.pipeline_mode<synchronous>, transform_indices = @transform_5, window_bounds = array<i64: 64, 32>}, {pipeline_mode = #tpu.pipeline_mode<synchronous>, transform_indices = @transform_6, window_bounds = array<i64: 1, 32>}, {pipeline_mode = #tpu.pipeline_mode<synchronous>, transform_indices = @transform_7, window_bounds = array<i64: 32, 128>}, {pipeline_mode = #tpu.pipeline_mode<synchronous>, transform_indices = @transform_8, window_bounds = array<i64: 1, 128>}, {transform_indices = @transform_9, window_bounds = array<i64: 32, 128>}]} {
    %c0 = arith.constant 0 : index
    %c0_0 = arith.constant 0 : index
    %0 = vector.load %arg1[%c0, %c0_0] : memref<32x18xf32, #tpu.memory_space<vmem>>, vector<32x18xf32>
    %1 = arith.truncf %0 : vector<32x18xf32> to vector<32x18xbf16>
    %c0_1 = arith.constant 0 : index
    %c0_2 = arith.constant 0 : index
    %2 = vector.load %arg2[%c0_1, %c0_2] : memref<18x128xbf16, #tpu.memory_space<vmem>>, vector<18x128xbf16>
    %cst = arith.constant dense<0.000000e+00> : vector<32x128xf32>
    %3 = tpu.matmul %1, %2, %cst {dimension_numbers = #tpu.dot_dimension_numbers<[1], [0], [0], [1], [0, 0, 1, 1], [], []>} : vector<32x18xbf16>, vector<18x128xbf16>, vector<32x128xf32> -> vector<32x128xf32>
    %c0_3 = arith.constant 0 : index
    %c0_4 = arith.constant 0 : index
    %4 = vector.load %arg3[%c0_3, %c0_4] : memref<1x128xf32, #tpu.memory_space<vmem>>, vector<1x128xf32>
    %5 = vector.broadcast %4 : vector<1x128xf32> to vector<32x128xf32>
    %6 = arith.addf %3, %5 : vector<32x128xf32>
    %7 = math.tanh %6 : vector<32x128xf32>
    %8 = arith.truncf %7 : vector<32x128xf32> to vector<32x128xbf16>
    %c0_5 = arith.constant 0 : index
    %c0_6 = arith.constant 0 : index
    %9 = vector.load %arg4[%c0_5, %c0_6] : memref<128x64xbf16, #tpu.memory_space<vmem>>, vector<128x64xbf16>
    %cst_7 = arith.constant dense<0.000000e+00> : vector<32x64xf32>
    %10 = tpu.matmul %8, %9, %cst_7 {dimension_numbers = #tpu.dot_dimension_numbers<[1], [0], [0], [1], [0, 0, 1, 1], [], []>} : vector<32x128xbf16>, vector<128x64xbf16>, vector<32x64xf32> -> vector<32x64xf32>
    %c0_8 = arith.constant 0 : index
    %c0_9 = arith.constant 0 : index
    %11 = vector.load %arg5[%c0_8, %c0_9] : memref<1x64xf32, #tpu.memory_space<vmem>>, vector<1x64xf32>
    %12 = vector.broadcast %11 : vector<1x64xf32> to vector<32x64xf32>
    %13 = arith.addf %10, %12 : vector<32x64xf32>
    %14 = math.tanh %13 : vector<32x64xf32>
    %15 = arith.truncf %14 : vector<32x64xf32> to vector<32x64xbf16>
    %c0_10 = arith.constant 0 : index
    %c0_11 = arith.constant 0 : index
    %16 = vector.load %arg6[%c0_10, %c0_11] : memref<64x32xbf16, #tpu.memory_space<vmem>>, vector<64x32xbf16>
    %cst_12 = arith.constant dense<0.000000e+00> : vector<32x32xf32>
    %17 = tpu.matmul %15, %16, %cst_12 {dimension_numbers = #tpu.dot_dimension_numbers<[1], [0], [0], [1], [0, 0, 1, 1], [], []>} : vector<32x64xbf16>, vector<64x32xbf16>, vector<32x32xf32> -> vector<32x32xf32>
    %c0_13 = arith.constant 0 : index
    %c0_14 = arith.constant 0 : index
    %18 = vector.load %arg7[%c0_13, %c0_14] : memref<1x32xf32, #tpu.memory_space<vmem>>, vector<1x32xf32>
    %19 = vector.broadcast %18 : vector<1x32xf32> to vector<32x32xf32>
    %20 = arith.addf %17, %19 : vector<32x32xf32>
    %21 = math.tanh %20 : vector<32x32xf32>
    %22 = arith.truncf %21 : vector<32x32xf32> to vector<32x32xbf16>
    %c0_15 = arith.constant 0 : index
    %c0_16 = arith.constant 0 : index
    %23 = vector.load %arg8[%c0_15, %c0_16] : memref<32x128xbf16, #tpu.memory_space<vmem>>, vector<32x128xbf16>
    %cst_17 = arith.constant dense<0.000000e+00> : vector<32x128xf32>
    %24 = tpu.matmul %22, %23, %cst_17 {dimension_numbers = #tpu.dot_dimension_numbers<[1], [0], [0], [1], [0, 0, 1, 1], [], []>} : vector<32x32xbf16>, vector<32x128xbf16>, vector<32x128xf32> -> vector<32x128xf32>
    %c0_18 = arith.constant 0 : index
    %c0_19 = arith.constant 0 : index
    %25 = vector.load %arg9[%c0_18, %c0_19] : memref<1x128xf32, #tpu.memory_space<vmem>>, vector<1x128xf32>
    %26 = vector.broadcast %25 : vector<1x128xf32> to vector<32x128xf32>
    %27 = arith.addf %24, %26 : vector<32x128xf32>
    %c0_20 = arith.constant 0 : index
    %c0_21 = arith.constant 0 : index
    %28 = vector.load %arg10[%c0_20, %c0_21] : memref<32x128xf32, #tpu.memory_space<vmem>>, vector<32x128xf32>
    tpu.vector_store %arg10[%c0_20, %c0_21], %27 {strides = array<i32>} : memref<32x128xf32, #tpu.memory_space<vmem>>, vector<32x128xf32>,
    return
  }
  func.func @transform_0(%arg0: i32) -> (i32, i32) {
    %c0_i32 = arith.constant 0 : i32
    %c0_i32_0 = arith.constant 0 : i32
    return %arg0, %c0_i32 : i32, i32
  }
  func.func @transform_1(%arg0: i32) -> (i32, i32) {
    %c0_i32 = arith.constant 0 : i32
    %c0_i32_0 = arith.constant 0 : i32
    %c0_i32_1 = arith.constant 0 : i32
    return %c0_i32, %c0_i32_0 : i32, i32
  }
  func.func @transform_2(%arg0: i32) -> (i32, i32) {
    %c0_i32 = arith.constant 0 : i32
    %c0_i32_0 = arith.constant 0 : i32
    %c0_i32_1 = arith.constant 0 : i32
    return %c0_i32, %c0_i32_0 : i32, i32
  }
  func.func @transform_3(%arg0: i32) -> (i32, i32) {
    %c0_i32 = arith.constant 0 : i32
    %c0_i32_0 = arith.constant 0 : i32
    %c0_i32_1 = arith.constant 0 : i32
    return %c0_i32, %c0_i32_0 : i32, i32
  }
  func.func @transform_4(%arg0: i32) -> (i32, i32) {
    %c0_i32 = arith.constant 0 : i32
    %c0_i32_0 = arith.constant 0 : i32
    %c0_i32_1 = arith.constant 0 : i32
    return %c0_i32, %c0_i32_0 : i32, i32
  }
  func.func @transform_5(%arg0: i32) -> (i32, i32) {
    %c0_i32 = arith.constant 0 : i32
    %c0_i32_0 = arith.constant 0 : i32
    %c0_i32_1 = arith.constant 0 : i32
    return %c0_i32, %c0_i32_0 : i32, i32
  }
  func.func @transform_6(%arg0: i32) -> (i32, i32) {
    %c0_i32 = arith.constant 0 : i32
    %c0_i32_0 = arith.constant 0 : i32
    %c0_i32_1 = arith.constant 0 : i32
    return %c0_i32, %c0_i32_0 : i32, i32
  }
  func.func @transform_7(%arg0: i32) -> (i32, i32) {
    %c0_i32 = arith.constant 0 : i32
    %c0_i32_0 = arith.constant 0 : i32
    %c0_i32_1 = arith.constant 0 : i32
    return %c0_i32, %c0_i32_0 : i32, i32
  }
  func.func @transform_8(%arg0: i32) -> (i32, i32) {
    %c0_i32 = arith.constant 0 : i32
    %c0_i32_0 = arith.constant 0 : i32
    %c0_i32_1 = arith.constant 0 : i32
    return %c0_i32, %c0_i32_0 : i32, i32
  }
  func.func @transform_9(%arg0: i32) -> (i32, i32) {
    %c0_i32 = arith.constant 0 : i32
    %c0_i32_0 = arith.constant 0 : i32
    return %arg0, %c0_i32 : i32, i32
  }
}

</mosaic_0001>

<bundles_post_ra>
// kernel: tpu_custom_call.1
= control target key start
LH: loop header
LB: loop body
LE: loop exit
PB: predicated region body
PF: predicated region fallthrough
CT: control target
= control target key end

     0   :  { %14 = vsyncpa [#allocation3], 0  ;;  %s1284_s0 = inlined_call_operand.vmem [shape: f32[64,18], index: 0, kind: input, shape index: {}]   ;;  %s1285_s1 = inlined_call_operand.vmem [shape: bf16[18,128], index: 1, kind: input, shape index: {}]   ;;  %s1286_s2 = inlined_call_operand.vmem [shape: f32[1,128], index: 2, kind: input, shape index: {}]   ;;  %s1287_s3 = inlined_call_operand.vmem [shape: bf16[128,64], index: 3, kind: input, shape index: {}]   ;;  %s1288_s4 = inlined_call_operand.vmem [shape: f32[1,64], index: 4, kind: input, shape index: {}]   ;;  %s1289_s5 = inlined_call_operand.vmem [shape: bf16[64,32], index: 5, kind: input, shape index: {}]   ;;  %s1290_s6 = inlined_call_operand.vmem [shape: f32[1,32], index: 6, kind: input, shape index: {}]   ;;  %s1291_s7 = inlined_call_operand.vmem [shape: bf16[32,128], index: 7, kind: input, shape index: {}]   ;;  %s1292_s8 = inlined_call_operand.vmem [shape: f32[1,128], index: 8, kind: input, shape index: {}]   ;;  %s1293_s9 = inlined_call_operand.hbm [shape: f32[64,128], index: 9, kind: output, shape index: {}]  }
   0x1   :  { %16 = vsyncpa [#allocation3 + $0x1], 0  ;;  %s1122_s30 = smov 0   ;;  %s1124_s10 = smov 0  }
   0x2   :  { %s1126_s11 = smov 0   ;;  %s1128_s12 = smov 0  }
   0x3 LB: > { %s1143_s13 = sadd.s32 4294967295, %s1067_s12   ;;  %s812_s14 = sadd.s32 4294967294, %s1067_s12   ;;  %s1067_s12 = sphi %s1128_s12, %s1299_s12   ;;  %s1063_s11 = sphi %s1126_s11, %s1298_s11   ;;  %s1059_s10 = sphi %s1124_s10, %s1297_s10   ;;  %s1055_s30 = sphi %s1122_s30, %s1296_s30  }
   0x4   : > { %s1147_s15 = sadd.s32 1, %s1067_s12   ;;  %s223_s16 = sadd.s32 1, %s1063_s11 }
   0x5   : > { %s220_s17 = ssub.s32 %s1067_s12, %s1147_s15  ;;  %p233_p0 = scmp.ne.s32.totalorder %s1063_s11, %s1059_s10 }
   0x6   : > { %p221_p1 = scmp.eq.s32.totalorder %s220_s17, 0  ;;  %p234_p2 = scmp.eq.s32.totalorder %s1143_s13, 1 }
   0x7   : > { %p239_p3 = scmp.ne.s32.totalorder %s1059_s10, %s1055_s30  ;;  %p240_p4 = scmp.eq.s32.totalorder %s812_s14, 1 }
   0x8   : > { %s1158_s18 = scalar_select %p221_p1, %s1063_s11, %s223_s16  }
   0x9   : > { %p1160_p5 = por %p234_p2, %p233_p0  ;;  %p1164_p6 = por %p240_p4, %p239_p3 }
   0xa   : > { %p815_p7 = scmp.ge.s32.totalorder %s1067_s12, 1  ;;  %p291_p8 = scmp.lt.s32.totalorder %s1067_s12, 3 }
   0xc   : > { %p292_p9 = pnand %p815_p7, %p291_p8 }
   0xd   : > { %v965_v0 = vld [vmem:[%s1285_s1] sm:$0xff] (!%p292_p9)   ;;  %vm367_vm0 = vcmask (!%p292_p9), 1040384   ;;  %v966_v1 = vld [vmem:[%s1285_s1 + $0x8] ss:$0 sps:$4 sm:$0x11] (!%p292_p9)   ;;  %s817_s25 = sshll.u32 (!%p292_p9), %s1143_s13, 2 }
   0xe   : > { %295 = sbr.rel (%p292_p9) target bundleno = 953 (0x3b9), region = 56  ;;  %875 = vmatprep.subr.bf16.mxu0 (!%p292_p9), %v965_v0  ;;  %p328_p10 = scmp.lt.s32.totalorder (!%p292_p9), %s817_s25, 7  ;;  %v369_v2 = vsel (!%p292_p9), %vm367_vm0, %v966_v1, 0  ;;  %v967_v3 = vld [vmem:[%s1287_s3] sm:$0xff] (!%p292_p9)   ;;  %v968_v4 = vld [vmem:[%s1287_s3 + $0x8] sm:$0xff] (!%p292_p9)   ;;  %v969_v5 = vld [vmem:[%s1287_s3 + $0x10] sm:$0xff] (!%p292_p9)  }
   0xf   : > { %876 = vmatpush3.bf16.msra.mxu0 (!%p292_p9), %v965_v0  ;;  %883 = vmatprep.subr.bf16.mxu1 (!%p292_p9), %v967_v3  ;;  %vm360_vm1 = vcmask (!%p292_p9), 146432   ;;  %v970_v12 = vld [vmem:[%s1287_s3 + $0x18] sm:$0xff] (!%p292_p9)   ;;  %v971_v13 = vld [vmem:[%s1287_s3 + $0x20] sm:$0xff] (!%p292_p9)   ;;  %v972_v14 = vld [vmem:[%s1287_s3 + $0x28] sm:$0xff] (!%p292_p9)   ;;  %vm591_vm2 = vcmask (!%p292_p9), 523264   ;;  %vm676_vm3 = vcmask (!%p292_p9), 261120  }
  0x10   : > { %923 = vmatprep.subr.msk.bf16.mxu0 (!%p292_p9), %vm367_vm0, %v966_v1  ;;  %884 = vmatpush3.bf16.msra.mxu1 (!%p292_p9), %v967_v3  ;;  %v973_v15 = vld [vmem:[%s1287_s3 + $0x30] sm:$0xff] (!%p292_p9)   ;;  %v974_v16 = vld [vmem:[%s1287_s3 + $0x38] sm:$0xff] (!%p292_p9)   ;;  %v819_v17 = vld [vmem:[%s1286_s2] ss:$0 sm:$0xff] (!%p292_p9)  ;;  %s324_s28 = sand.u32 (!%p292_p9), 1, %s1059_s10   ;;  %s850_s22 = sshll.u32 (!%p292_p9), %s1143_s13, 9 }
  0x11   : > { %885 = vmatprep.subr.bf16.mxu1 (!%p292_p9), %v968_v4  ;;  %v975_v32 = vld [vmem:[%s1289_s5] sm:$0xff] (!%p292_p9)   ;;  %v976_v33 = vld [vmem:[%s1289_s5 + $0x8] sm:$0xff] (!%p292_p9)   ;;  %v977_v34 = vld [vmem:[%s1289_s5 + $0x10] sm:$0xff] (!%p292_p9)   ;;  %s816_s29 = sshll.u32 (!%p292_p9), %s324_s28, 5  ;;  %s1243_s13 = scalar_lea.sflag (!%p292_p9), [#allocation3], %s324_s28 }
  0x12   : > { %v978_v35 = vld [vmem:[%s1289_s5 + $0x18] sm:$0xff] (!%p292_p9)   ;;  %v824_v36 = vld [vmem:[%s1288_s4] ss:$0 sm:$0xff] (!%p292_p9)  ;;  %v980_v52 = vld [vmem:[%s1291_s7 + $0x8] sm:$0xff] (!%p292_p9)   ;;  %s326_s17 = scalar_lea.vmem (!%p292_p9), [#allocation2], %s816_s29  ;;  %s1069_s27 = smov (!%p292_p9), [#allocation2]  }
  0x13   : > { %878 = vmatpush3.bf16.msra.mxu0 (!%p292_p9), %v369_v2  ;;  %v979_v51 = vld [vmem:[%s1291_s7] sm:$0xff] (!%p292_p9)   ;;  %s750_s21 = sshll.u32 (!%p292_p9), %s326_s17, 4  ;;  %s1009_s29 = sshll.u32 (!%p292_p9), %s1069_s27, 4  ;;  %s1236_s21 = int_to_ptr.vmem [resolvable:$true] %s750_s21  ;;  %s1010_s29 = int_to_ptr.vmem [resolvable:$false] %s1009_s29 }
  0x14   : > { %886 = vmatpush3.bf16.msra.mxu1 (!%p292_p9), %v968_v4  ;;  %903 = vmatprep.subr.bf16.mxu0 (!%p292_p9), %v975_v32  ;;  %v833_v53 = vld [vmem:[%s1290_s6] ss:$0 sm:$0xff] (!%p292_p9)  ;;  %s1005_s26 = scalar_lea.vmem (!%p292_p9), %s1236_s21, 512  ;;  %p1012_p0 = scmp.lt.s32.totalorder (!%p292_p9), %s1236_s21, %s1010_s29 }
  0x15   : > { %s1301_s25 = smov (!%p328_p10, %s817_s25), 7  ;;  %887 = vmatprep.subr.bf16.mxu1 %v969_v5  ;;  %v840_v4 = vld [vmem:[%s1292_s8] ss:$0 sm:$0xff]  ;;  %p1006_p11 = scmp.ne.s32.totalorder %s1236_s21, %s1005_s26 }
  0x16   : > { %s818_s14 = sshll.u32 %s1301_s25, 3  ;;  %s1241_s25 = scalar_lea.hbm %s1293_s9, %s850_s22 }
  0x17   : > { %s331_s23 = scalar_lea.vmem %s1284_s0, %s818_s14  ;;  %p1007_p12 = pnand %p1006_p11, %p1160_p5 }
  0x18   : > { %v335_v6 = vld [vmem:[%s331_s23] sm:$0xff]  ;;  %v336_v7 = vld [vmem:[%s331_s23 + $0x8] sm:$0xff]  ;;  %v337_v8 = vld [vmem:[%s331_s23 + $0x10] sm:$0xff]  ;;  %888 = vmatpush3.bf16.msra.mxu1 %v969_v5  ;;  %s1011_s14 = scalar_lea.vmem %s1010_s29, 1024 }
  0x19   : > { %v339_v9 = vpack.c.bf16 %v336_v7, %v335_v6  ;;  %v338_v10 = vld [vmem:[%s331_s23 + $0x18] sm:$0xff]  ;;  %889 = vmatprep.subr.bf16.mxu1 %v970_v12  ;;  %p1008_p13 = pneg %p1007_p12  ;;  %p1013_p1 = scmp.lt.s32.totalorder %s1011_s14, %s1005_s26 }
  0x1a   : > { %v340_v11 = vpack.c.bf16 %v338_v10, %v337_v8 }
  0x1b   : > { %879 = vmatprep.mubr.msk.bf16.mxu0 %vm360_vm1, %v339_v9  ;;  %p1014_p2 = por %p1013_p1, %p1012_p0 }
  0x1c   : > { %880 = vmatmul.mubr.msk.bf16.vlgmr.msra.gmra.mrb[0].mxu0 %vm360_vm1, %v340_v11  ;;  %890 = vmatpush3.bf16.msra.mxu1 %v970_v12 }
  0x1d   : > { %891 = vmatprep.subr.bf16.mxu1 %v971_v13  ;;  %904 = vmatpush3.bf16.msra.mxu0 %v975_v32  ;;  %p1015_p3 = pnand %p1014_p2, %p1008_p13 }
  0x1e   : > { %905 = vmatprep.subr.bf16.mxu0 %v976_v33 }
  0x20   : > { %892 = vmatpush3.bf16.msra.mxu1 %v971_v13 }
  0x21   : > { %893 = vmatprep.subr.bf16.mxu1 %v972_v14  ;;  %906 = vmatpush3.bf16.msra.mxu0 %v976_v33 }
  0x22   : > { %907 = vmatprep.subr.bf16.mxu0 %v977_v34 }
  0x24   : > { %894 = vmatpush3.bf16.msra.mxu1 %v972_v14 }
  0x25   : > { %895 = vmatprep.subr.bf16.mxu1 %v973_v15  ;;  %908 = vmatpush3.bf16.msra.mxu0 %v977_v34 }
  0x26   : > { %909 = vmatprep.subr.bf16.mxu0 %v978_v35 }
  0x28   : > { %896 = vmatpush3.bf16.msra.mxu1 %v973_v15 }
  0x29   : > { %897 = vmatprep.subr.bf16.mxu1 %v974_v16  ;;  %910 = vmatpush3.bf16.msra.mxu0 %v978_v35 }
  0x2a   : > { %915 = vmatprep.subr.bf16.mxu0 %v979_v51 }
  0x2c   : > { %898 = vmatpush3.bf16.msra.mxu1 %v974_v16 }
  0xef   : > { %v881_v18 = vpop.f32.mrb[0].mxu0 }
  0xf0   : > { %v414_v19 = vadd.f32 %v881_v18, %v819_v17  ;;  %v405_v20 = vpop.f32.mrb[1].mxu0 }
  0xf1   : > { %v406_v21 = vadd.f32 %v819_v17, %v405_v20  ;;  %v882_v22 = vpop.f32.mrb[2].mxu0 }
  0xf2   : > { %981 = vtanh.f32 %v414_v19  ;;  %v417_v23 = vadd.f32 %v882_v22, %v819_v17  ;;  %v408_v24 = vpop.f32.mrb[3].mxu0 }
  0xf3   : > { %983 = vtanh.f32 %v406_v21  ;;  %v409_v25 = vadd.f32 %v819_v17, %v408_v24 }
  0xf4   : > { %985 = vtanh.f32 %v417_v23 }
  0xf5   : > { %987 = vtanh.f32 %v409_v25 }
  0xfc   : > { %v982_v26 = vpop.eup %981 }
  0xfd   : > { %v984_v27 = vpop.eup %983 }
  0xfe   : > { %v986_v28 = vpop.eup %985 }
  0xff   : > { %v988_v29 = vpop.eup %987  ;;  %v425_v30 = vpack.c.bf16 %v986_v28, %v982_v26 }
 0x100   : > { %v424_v31 = vpack.c.bf16 %v988_v29, %v984_v27 }
 0x102   : > { %899 = vmatprep.mubr.bf16.mxu1 %v424_v31 }
 0x103   : > { %900 = vmatmul.mubr.bf16.vlgmr.msra.gmra.mrb[0].mxu1 %v425_v30 }
 0x1d6   : > { %v901_v37 = vpop.f32.mrb[0].mxu1 }
 0x1d7   : > { %v540_v38 = vadd.f32 %v901_v37, %v824_v36  ;;  %v531_v39 = vpop.f32.mrb[1].mxu1 }
 0x1d8   : > { %v532_v40 = vadd.f32 %v824_v36, %v531_v39  ;;  %v902_v41 = vpop.f32.mrb[2].mxu1 }
 0x1d9   : > { %989 = vtanh.f32 %v540_v38  ;;  %v543_v42 = vadd.f32 %v902_v41, %v824_v36  ;;  %v534_v43 = vpop.f32.mrb[3].mxu1 }
 0x1da   : > { %991 = vtanh.f32 %v532_v40  ;;  %v535_v44 = vadd.f32 %v824_v36, %v534_v43 }
 0x1db   : > { %993 = vtanh.f32 %v543_v42 }
 0x1dc   : > { %995 = vtanh.f32 %v535_v44 }
 0x1e3   : > { %v990_v45 = vpop.eup %989 }
 0x1e4   : > { %v992_v46 = vpop.eup %991 }
 0x1e5   : > { %v994_v47 = vpop.eup %993 }
 0x1e6   : > { %v996_v48 = vpop.eup %995  ;;  %v551_v49 = vpack.c.bf16 %v994_v47, %v990_v45 }
 0x1e7   : > { %v550_v50 = vpack.c.bf16 %v996_v48, %v992_v46 }
 0x1e9   : > { %911 = vmatprep.mubr.msk.bf16.mxu0 %vm591_vm2, %v550_v50 }
 0x1ea   : > { %912 = vmatmul.mubr.msk.bf16.vlgmr.msra.gmra.mrb[4].mxu0 %vm591_vm2, %v551_v49 }
 0x1eb   : > { %916 = vmatpush3.bf16.msra.mxu0 %v979_v51 }
 0x1ec   : > { %917 = vmatprep.subr.bf16.mxu0 %v980_v52 }
 0x1ef   : > { %918 = vmatpush3.bf16.msra.mxu0 %v980_v52 }
 0x2bd   : > { %v913_v54 = vpop.f32.mrb[4].mxu0 }
 0x2be   : > { %v641_v55 = vadd.f32 %v913_v54, %v833_v53  ;;  %v632_v56 = vpop.f32.mrb[5].mxu0 }
 0x2bf   : > { %v633_v57 = vadd.f32 %v833_v53, %v632_v56  ;;  %v914_v58 = vpop.f32.mrb[6].mxu0 }
 0x2c0   : > { %997 = vtanh.f32 %v641_v55  ;;  %v644_v59 = vadd.f32 %v914_v58, %v833_v53  ;;  %v635_v60 = vpop.f32.mrb[7].mxu0 }
 0x2c1   : > { %999 = vtanh.f32 %v633_v57  ;;  %v636_v61 = vadd.f32 %v833_v53, %v635_v60 }
 0x2c2   : > { %1001 = vtanh.f32 %v644_v59 }
 0x2c3   : > { %1003 = vtanh.f32 %v636_v61 }
 0x2ca   : > { %v998_v62 = vpop.eup %997 }
 0x2cb   : > { %v1000_v63 = vpop.eup %999 }
 0x2cc   : > { %v1002_v0 = vpop.eup %1001 }
 0x2cd   : > { %v1004_v1 = vpop.eup %1003  ;;  %v652_v2 = vpack.c.bf16 %v1002_v0, %v998_v62 }
 0x2ce   : > { %v651_v3 = vpack.c.bf16 %v1004_v1, %v1000_v63 }
 0x2d0   : > { %919 = vmatprep.mubr.msk.bf16.mxu0 %vm676_vm3, %v651_v3 }
 0x2d1   : > { %920 = vmatmul.mubr.msk.bf16.vlgmr.msra.gmra.mrb[8].mxu0 %vm676_vm3, %v652_v2 }
 0x3a4   : > { %v921_v5 = vpop.f32.mrb[8].mxu0 }
 0x3a5   : > { %v726_v6 = vadd.f32 %v921_v5, %v840_v4  ;;  %v717_v7 = vpop.f32.mrb[9].mxu0 }
 0x3a6   : > { %v718_v8 = vadd.f32 %v840_v4, %v717_v7  ;;  %v922_v9 = vpop.f32.mrb[10].mxu0 }
 0x3a7   : > { %734 = vst [vmem:[%s326_s17 + $0x10] sm:$0xff] %v726_v6  ;;  %v729_v10 = vadd.f32 %v922_v9, %v840_v4  ;;  %v720_v11 = vpop.f32.mrb[11].mxu0 }
 0x3a8   : > { %732 = vst [vmem:[%s326_s17] sm:$0xff] %v718_v8  ;;  %v721_v12 = vadd.f32 %v840_v4, %v720_v11 }
 0x3a9   : > { %735 = vst [vmem:[%s326_s17 + $0x18] sm:$0xff] %v729_v10 }
 0x3aa   : > { %733 = vst [vmem:[%s326_s17 + $0x8] sm:$0xff] %v721_v12 }
 0x3ab   : > { %1018 = shalt.err (!%p1015_p3)
}
 0x3ac   : > { %s1019_s28 = scalar_lea.hbm %s1241_s25, 512  ;;  %s1023_s22 = scalar_lea.hbm %s1293_s9, 1024 }
 0x3ad   : > { %p1020_p4 = scmp.ne.s32.totalorder %s1241_s25, %s1019_s28  ;;  %p1024_p9 = scmp.lt.u32.totalorder %s1241_s25, %s1293_s9 }
 0x3ae   : > { %p1025_p10 = scmp.lt.u32.totalorder %s1023_s22, %s1019_s28  ;;  %p1027_p12 = scmp.lt.u32.totalorder %s1019_s28, %s1241_s25 }
 0x3af   : > { %p1021_p7 = pnand %p1020_p4, %p1160_p5 }
 0x3b0   : > { %p1026_p11 = por %p1025_p10, %p1024_p9 }
 0x3b1   : > { %p1022_p8 = pneg %p1021_p7 }
 0x3b2   : > { %p1028_p13 = por %p1027_p12, %p1026_p11 }
 0x3b4   : > { %p1029_p0 = pnand %p1028_p13, %p1022_p8 }
 0x3b6   : > { %1032 = shalt.err (!%p1029_p0)
}
 0x3b7   : > { %s1070_s26 = smov 128   ;;  %s1071_s27 = smov 8  }
 0x3b8   : > { %924 = dma.vmem_to_hbm [thread:$0]  (%p1160_p5), %s1236_s21, 512, %s1241_s25, %s1243_s13, %s1070_s26, %s1070_s26, %s1071_s27  }
 0x3b9 PF: > { %p930_p1 = scmp.ge.s32.totalorder %s1067_s12, 2  ;;  %s765_s29 = sand.u32 1, %s1055_s30  }
 0x3ba   : > { %s766_s14 = scalar_lea.sflag [#allocation3], %s765_s29 }
 0x3bb   : > { %p927_p2 = pnand %p930_p1, %p1164_p6 }
 0x3bd   : > { %1050 = dma.done.wait (!%p927_p2), %s766_s14, 512  }
 0x3be   : > { %1052 = vsyncadd (!%p927_p2), %s766_s14, 4294966784  ;;  %p19_p3 = scmp.ge.s32.totalorder %s1147_s15, 4   ;;  %s1296_s30 = smov %s1059_s10 }
 0x3bf   : > { %s1297_s10 = smov %s1063_s11  ;;  %s1298_s11 = smov %s1158_s18 }
 0x3c0   : > { %s1299_s12 = smov %s1147_s15  ;;  %21 = sbr.rel (!%p19_p3) target bundleno = 3 (0x3), region = 91 }
 0x3c7   :  { %771 = vsyncpa [#allocation3], 1 }
 0x3c8   :  { %773 = vsyncpa [#allocation3 + $0x1], 1 }

</bundles_post_ra>
